<compile_context>
chip_gen: v6e
topology: v6e:2x2x1
jax: 0.10.0
libtpu: 0.0.40
codegen_flags: <defaults>
</compile_context>

<pallas_src>
import math
import functools

import jax
import jax.numpy as jnp
from jax.experimental import pallas as pl
from jax.experimental.pallas import tpu as pltpu


def _attention_kernel(q_ref, enc_ref, bias_ref,
                      wq_ref, bq_ref, wk_ref, bk_ref, wv_ref, bv_ref,
                      out_ref, *, batch_block, t_q, t_k, hidden_dim):
    bb, Tq, Tk, H = batch_block, t_q, t_k, hidden_dim

    # Projections. Weights are pre-transposed to (F, H) in the wrapper; Wq/bq are
    # pre-scaled by 1/sqrt(H). Inputs arrive already flattened to (bb*T, F).
    Q = jnp.dot(q_ref[...], wq_ref[...],
                preferred_element_type=jnp.float32) + bq_ref[...]     # (bb*Tq, H)
    K = jnp.dot(enc_ref[...], wk_ref[...],
                preferred_element_type=jnp.float32) + bk_ref[...]     # (bb*Tk, H)
    V = jnp.dot(enc_ref[...], wv_ref[...],
                preferred_element_type=jnp.float32) + bv_ref[...]     # (bb*Tk, H)

    Qb = Q.reshape(bb, Tq, H)
    Kb = K.reshape(bb, Tk, H)
    Vb = V.reshape(bb, Tk, H)

    # Scaled dot-product scores (scale already folded into Wq) plus additive mask
    # bias (0.0 where allowed, -1e30 where masked -> exp underflows to exactly 0).
    S = jnp.einsum('bqh,bkh->bqk', Qb, Kb,
                   preferred_element_type=jnp.float32) + bias_ref[...][None]   # (bb, Tq, Tk)

    # Numerically stable softmax over the key axis. Exact divide: this kernel is
    # launch/DMA-bound, the EUP approximate reciprocal buys nothing here.
    m = jnp.max(S, axis=-1, keepdims=True)
    e = jnp.exp(S - m)
    P = e / jnp.sum(e, axis=-1, keepdims=True)

    out = jnp.einsum('bqk,bkh->bqh', P, Vb,
                     preferred_element_type=jnp.float32)              # (bb, Tq, H)
    # Lane-dense store: (bb, Tq*H) with Tq*H a multiple of 128 at these shapes.
    out_ref[...] = out.reshape(bb, Tq * H).astype(out_ref.dtype)


def attention_forward(query, encoder_states, target_mask,
                      wq, bq, wk, bk, wv, bv):
    """query: (B, Tq, F), encoder_states: (B, Tk, F), target_mask: (Tq, Tk) bool/{0,1}."""
    B, Tq, F = query.shape
    _, Tk, _ = encoder_states.shape
    H = wq.shape[0]

    # Additive mask bias precomputed in the wrapper (one vadd in the kernel).
    if target_mask is None:
        bias = jnp.zeros((Tq, Tk), jnp.float32)
    else:
        bias = jnp.where(jnp.asarray(target_mask) != 0,
                         jnp.float32(0.0), jnp.float32(-1e30))

    # Pre-transpose weights (torch Linear stores (H, F)); fold 1/sqrt(H) into Wq/bq.
    scale = 1.0 / math.sqrt(float(H))
    wq_t = (jnp.asarray(wq, jnp.float32) * scale).T                    # (F, H), pre-scaled
    bq2 = (jnp.asarray(bq, jnp.float32) * scale).reshape(1, H)
    wk_t = jnp.asarray(wk, jnp.float32).T                              # (F, H)
    bk2 = jnp.asarray(bk, jnp.float32).reshape(1, H)
    wv_t = jnp.asarray(wv, jnp.float32).T                              # (F, H)
    bv2 = jnp.asarray(bv, jnp.float32).reshape(1, H)

    # Single grid step by default (v5e/v6e: one TensorCore; grid steps are a serial
    # loop). Only split 2-way (v7x second TC) when each half has substantial rows
    # and the halves stay (8,128)-tile aligned.
    if B % 16 == 0 and (B // 2) * Tq >= 256:
        num_blocks = 2
    else:
        num_blocks = 1
    batch_block = B // num_blocks

    # Batch fold done wrapper-side: kernel sees 2-D (rows, F) slabs.
    q2 = query.reshape(B * Tq, F).astype(jnp.float32)
    e2 = encoder_states.reshape(B * Tk, F).astype(jnp.float32)

    kernel = functools.partial(_attention_kernel,
                               batch_block=batch_block, t_q=Tq, t_k=Tk, hidden_dim=H)

    out2 = pl.pallas_call(
        kernel,
        out_shape=jax.ShapeDtypeStruct((B, Tq * H), jnp.float32),
        grid_spec=pltpu.PrefetchScalarGridSpec(
            num_scalar_prefetch=0,
            grid=(num_blocks,),
            in_specs=[
                pl.BlockSpec((batch_block * Tq, F), lambda g: (g, 0)),   # query rows
                pl.BlockSpec((batch_block * Tk, F), lambda g: (g, 0)),   # encoder rows
                pl.BlockSpec((Tq, Tk),              lambda g: (0, 0)),   # mask bias (shared)
                pl.BlockSpec((F, H),                lambda g: (0, 0)),   # Wq^T (pre-scaled)
                pl.BlockSpec((1, H),                lambda g: (0, 0)),   # bq (pre-scaled)
                pl.BlockSpec((F, H),                lambda g: (0, 0)),   # Wk^T
                pl.BlockSpec((1, H),                lambda g: (0, 0)),   # bk
                pl.BlockSpec((F, H),                lambda g: (0, 0)),   # Wv^T
                pl.BlockSpec((1, H),                lambda g: (0, 0)),   # bv
            ],
            out_specs=pl.BlockSpec((batch_block, Tq * H), lambda g: (g, 0)),
        ),
        compiler_params=pltpu.CompilerParams(
            dimension_semantics=("parallel",)),
    )(q2, e2, bias, wq_t, bq2, wk_t, bk2, wv_t, bv2)

    return out2.reshape(B, Tq, H)


def _reference(query, encoder_states, target_mask, wq, bq, wk, bk, wv, bv, H):
    Q = query @ wq.T + bq
    K = encoder_states @ wk.T + bk
    V = encoder_states @ wv.T + bv
    S = (Q @ jnp.swapaxes(K, -2, -1)) / jnp.sqrt(jnp.float32(H))
    S = jnp.where(target_mask[None] != 0, S, -jnp.inf)
    P = jax.nn.softmax(S, axis=-1)
    return P @ V


if __name__ == "__main__":
    # Small shapes consistent with the module's forward.
    B, Tq, Tk, F, H = 2, 8, 8, 16, 32

    key = jax.random.PRNGKey(0)
    k1, k2, k3, k4, k5, k6, k7, k8 = jax.random.split(key, 8)

    # Deterministic nn.Linear-style init (uniform +-1/sqrt(fan_in)).
    bound = 1.0 / math.sqrt(F)
    wq = jax.random.uniform(k1, (H, F), jnp.float32, -bound, bound)
    bq = jax.random.uniform(k2, (H,),   jnp.float32, -bound, bound)
    wk = jax.random.uniform(k3, (H, F), jnp.float32, -bound, bound)
    bk = jax.random.uniform(k4, (H,),   jnp.float32, -bound, bound)
    wv = jax.random.uniform(k5, (H, F), jnp.float32, -bound, bound)
    bv = jax.random.uniform(k6, (H,),   jnp.float32, -bound, bound)

    query = jax.random.normal(k7, (B, Tq, F), jnp.float32)
    encoder_states = jax.random.normal(k8, (B, Tk, F), jnp.float32)

    # Causal-style target mask like the docstring example ([[True,False],[True,True]]).
    target_mask = jnp.tril(jnp.ones((Tq, Tk), dtype=jnp.float32))

    out = attention_forward(query, encoder_states, target_mask,
                            wq, bq, wk, bk, wv, bv)
    out = jax.block_until_ready(out)

    ref = _reference(query, encoder_states, target_mask, wq, bq, wk, bk, wv, bv, H)
    assert out.shape == (B, Tq, H)
    # Exact softmax division -> near-f32 parity with the reference.
    assert jnp.allclose(out, ref, atol=1e-4, rtol=1e-4), float(jnp.max(jnp.abs(out - ref)))

    print("KERNEL_OK")
</pallas_src>

<mosaic_0001>
module attributes {stable_mosaic.version = 11 : i64} {
  func.func @_attention_kernel(%arg0: i32, %arg1: memref<16x16xf32, #tpu.memory_space<vmem>>, %arg2: memref<16x16xf32, #tpu.memory_space<vmem>>, %arg3: memref<8x8xf32, #tpu.memory_space<vmem>>, %arg4: memref<16x32xf32, #tpu.memory_space<vmem>>, %arg5: memref<1x32xf32, #tpu.memory_space<vmem>>, %arg6: memref<16x32xf32, #tpu.memory_space<vmem>>, %arg7: memref<1x32xf32, #tpu.memory_space<vmem>>, %arg8: memref<16x32xf32, #tpu.memory_space<vmem>>, %arg9: memref<1x32xf32, #tpu.memory_space<vmem>>, %arg10: memref<2x256xf32, #tpu.memory_space<vmem>>) attributes {dimension_semantics = [#tpu.dimension_semantics<parallel>], iteration_bounds = array<i64: 1>, scalar_prefetch = 0 : i64, scratch_operands = 0 : i64, tpu.core_type = #tpu.core_type<tc>, window_params = [{transform_indices = @transform_0, window_bounds = array<i64: 16, 16>}, {transform_indices = @transform_1, window_bounds = array<i64: 16, 16>}, {pipeline_mode = #tpu.pipeline_mode<synchronous>, transform_indices = @transform_2, window_bounds = array<i64: 8, 8>}, {pipeline_mode = #tpu.pipeline_mode<synchronous>, transform_indices = @transform_3, window_bounds = array<i64: 16, 32>}, {pipeline_mode = #tpu.pipeline_mode<synchronous>, transform_indices = @transform_4, window_bounds = array<i64: 1, 32>}, {pipeline_mode = #tpu.pipeline_mode<synchronous>, transform_indices = @transform_5, window_bounds = array<i64: 16, 32>}, {pipeline_mode = #tpu.pipeline_mode<synchronous>, transform_indices = @transform_6, window_bounds = array<i64: 1, 32>}, {pipeline_mode = #tpu.pipeline_mode<synchronous>, transform_indices = @transform_7, window_bounds = array<i64: 16, 32>}, {pipeline_mode = #tpu.pipeline_mode<synchronous>, transform_indices = @transform_8, window_bounds = array<i64: 1, 32>}, {transform_indices = @transform_9, window_bounds = array<i64: 2, 256>}]} {
    %c0 = arith.constant 0 : index
    %c0_0 = arith.constant 0 : index
    %0 = vector.load %arg1[%c0, %c0_0] : memref<16x16xf32, #tpu.memory_space<vmem>>, vector<16x16xf32>
    %c0_1 = arith.constant 0 : index
    %c0_2 = arith.constant 0 : index
    %1 = vector.load %arg4[%c0_1, %c0_2] : memref<16x32xf32, #tpu.memory_space<vmem>>, vector<16x32xf32>
    %cst = arith.constant dense<0.000000e+00> : vector<16x32xf32>
    %2 = tpu.matmul %0, %1, %cst {dimension_numbers = #tpu.dot_dimension_numbers<[1], [0], [0], [1], [0, 0, 1, 1], [], []>} : vector<16x16xf32>, vector<16x32xf32>, vector<16x32xf32> -> vector<16x32xf32>
    %c0_3 = arith.constant 0 : index
    %c0_4 = arith.constant 0 : index
    %3 = vector.load %arg5[%c0_3, %c0_4] : memref<1x32xf32, #tpu.memory_space<vmem>>, vector<1x32xf32>
    %4 = vector.broadcast %3 : vector<1x32xf32> to vector<16x32xf32>
    %5 = arith.addf %2, %4 : vector<16x32xf32>
    %c0_5 = arith.constant 0 : index
    %c0_6 = arith.constant 0 : index
    %6 = vector.load %arg2[%c0_5, %c0_6] : memref<16x16xf32, #tpu.memory_space<vmem>>, vector<16x16xf32>
    %c0_7 = arith.constant 0 : index
    %c0_8 = arith.constant 0 : index
    %7 = vector.load %arg6[%c0_7, %c0_8] : memref<16x32xf32, #tpu.memory_space<vmem>>, vector<16x32xf32>
    %cst_9 = arith.constant dense<0.000000e+00> : vector<16x32xf32>
    %8 = tpu.matmul %6, %7, %cst_9 {dimension_numbers = #tpu.dot_dimension_numbers<[1], [0], [0], [1], [0, 0, 1, 1], [], []>} : vector<16x16xf32>, vector<16x32xf32>, vector<16x32xf32> -> vector<16x32xf32>
    %c0_10 = arith.constant 0 : index
    %c0_11 = arith.constant 0 : index
    %9 = vector.load %arg7[%c0_10, %c0_11] : memref<1x32xf32, #tpu.memory_space<vmem>>, vector<1x32xf32>
    %10 = vector.broadcast %9 : vector<1x32xf32> to vector<16x32xf32>
    %11 = arith.addf %8, %10 : vector<16x32xf32>
    %c0_12 = arith.constant 0 : index
    %c0_13 = arith.constant 0 : index
    %12 = vector.load %arg2[%c0_12, %c0_13] : memref<16x16xf32, #tpu.memory_space<vmem>>, vector<16x16xf32>
    %c0_14 = arith.constant 0 : index
    %c0_15 = arith.constant 0 : index
    %13 = vector.load %arg8[%c0_14, %c0_15] : memref<16x32xf32, #tpu.memory_space<vmem>>, vector<16x32xf32>
    %cst_16 = arith.constant dense<0.000000e+00> : vector<16x32xf32>
    %14 = tpu.matmul %12, %13, %cst_16 {dimension_numbers = #tpu.dot_dimension_numbers<[1], [0], [0], [1], [0, 0, 1, 1], [], []>} : vector<16x16xf32>, vector<16x32xf32>, vector<16x32xf32> -> vector<16x32xf32>
    %c0_17 = arith.constant 0 : index
    %c0_18 = arith.constant 0 : index
    %15 = vector.load %arg9[%c0_17, %c0_18] : memref<1x32xf32, #tpu.memory_space<vmem>>, vector<1x32xf32>
    %16 = vector.broadcast %15 : vector<1x32xf32> to vector<16x32xf32>
    %17 = arith.addf %14, %16 : vector<16x32xf32>
    %18 = vector.shape_cast %5 : vector<16x32xf32> to vector<2x8x32xf32>
    %19 = vector.shape_cast %11 : vector<16x32xf32> to vector<2x8x32xf32>
    %20 = vector.shape_cast %17 : vector<16x32xf32> to vector<2x8x32xf32>
    "tpu.trace_start"() <{level = 10 : i32, message = "bqh,bkh->bqk"}> : () -> ()
    %cst_19 = arith.constant dense<0.000000e+00> : vector<2x8x8xf32>
    %21 = tpu.matmul %18, %19, %cst_19 {dimension_numbers = #tpu.dot_dimension_numbers<[2], [2], [1], [1], [0, 0, 0, 1, 1, 1], [0], [0]>} : vector<2x8x32xf32>, vector<2x8x32xf32>, vector<2x8x8xf32> -> vector<2x8x8xf32>
    "tpu.trace_stop"() : () -> ()
    %c0_20 = arith.constant 0 : index
    %c0_21 = arith.constant 0 : index
    %22 = vector.load %arg3[%c0_20, %c0_21] : memref<8x8xf32, #tpu.memory_space<vmem>>, vector<8x8xf32>
    %23 = vector.shape_cast %22 : vector<8x8xf32> to vector<1x8x8xf32>
    %24 = vector.broadcast %23 : vector<1x8x8xf32> to vector<2x8x8xf32>
    %25 = arith.addf %21, %24 : vector<2x8x8xf32>
    %cst_22 = arith.constant dense<0xFF800000> : vector<2x8xf32>
    %26 = vector.multi_reduction <maximumf>, %25, %cst_22 [2] : vector<2x8x8xf32> to vector<2x8xf32>
    %27 = vector.shape_cast %26 : vector<2x8xf32> to vector<2x8x1xf32>
    %28 = vector.broadcast %27 : vector<2x8x1xf32> to vector<2x8x8xf32>
    %29 = arith.subf %25, %28 : vector<2x8x8xf32>
    %30 = math.exp %29 : vector<2x8x8xf32>
    %cst_23 = arith.constant dense<0.000000e+00> : vector<2x8xf32>
    %31 = vector.multi_reduction <add>, %30, %cst_23 [2] : vector<2x8x8xf32> to vector<2x8xf32>
    %32 = vector.shape_cast %31 : vector<2x8xf32> to vector<2x8x1xf32>
    %33 = vector.broadcast %32 : vector<2x8x1xf32> to vector<2x8x8xf32>
    %34 = arith.divf %30, %33 : vector<2x8x8xf32>
    "tpu.trace_start"() <{level = 10 : i32, message = "bqk,bkh->bqh"}> : () -> ()
    %cst_24 = arith.constant dense<0.000000e+00> : vector<2x8x32xf32>
    %35 = tpu.matmul %34, %20, %cst_24 {dimension_numbers = #tpu.dot_dimension_numbers<[2], [1], [1], [2], [0, 0, 0, 1, 1, 2], [0], [0]>} : vector<2x8x8xf32>, vector<2x8x32xf32>, vector<2x8x32xf32> -> vector<2x8x32xf32>
    "tpu.trace_stop"() : () -> ()
    %36 = vector.shape_cast %35 : vector<2x8x32xf32> to vector<2x256xf32>
    %c0_25 = arith.constant 0 : index
    %c0_26 = arith.constant 0 : index
    %37 = vector.load %arg10[%c0_25, %c0_26] : memref<2x256xf32, #tpu.memory_space<vmem>>, vector<2x256xf32>
    tpu.vector_store %arg10[%c0_25, %c0_26], %36 {strides = array<i32>} : memref<2x256xf32, #tpu.memory_space<vmem>>, vector<2x256xf32>,
    return
  }
  func.func @transform_0(%arg0: i32) -> (i32, i32) {
    %c0_i32 = arith.constant 0 : i32
    %c0_i32_0 = arith.constant 0 : i32
    return %arg0, %c0_i32 : i32, i32
  }
  func.func @transform_1(%arg0: i32) -> (i32, i32) {
    %c0_i32 = arith.constant 0 : i32
    %c0_i32_0 = arith.constant 0 : i32
    return %arg0, %c0_i32 : i32, i32
  }
  func.func @transform_2(%arg0: i32) -> (i32, i32) {
    %c0_i32 = arith.constant 0 : i32
    %c0_i32_0 = arith.constant 0 : i32
    %c0_i32_1 = arith.constant 0 : i32
    return %c0_i32, %c0_i32_0 : i32, i32
  }
  func.func @transform_3(%arg0: i32) -> (i32, i32) {
    %c0_i32 = arith.constant 0 : i32
    %c0_i32_0 = arith.constant 0 : i32
    %c0_i32_1 = arith.constant 0 : i32
    return %c0_i32, %c0_i32_0 : i32, i32
  }
  func.func @transform_4(%arg0: i32) -> (i32, i32) {
    %c0_i32 = arith.constant 0 : i32
    %c0_i32_0 = arith.constant 0 : i32
    %c0_i32_1 = arith.constant 0 : i32
    return %c0_i32, %c0_i32_0 : i32, i32
  }
  func.func @transform_5(%arg0: i32) -> (i32, i32) {
    %c0_i32 = arith.constant 0 : i32
    %c0_i32_0 = arith.constant 0 : i32
    %c0_i32_1 = arith.constant 0 : i32
    return %c0_i32, %c0_i32_0 : i32, i32
  }
  func.func @transform_6(%arg0: i32) -> (i32, i32) {
    %c0_i32 = arith.constant 0 : i32
    %c0_i32_0 = arith.constant 0 : i32
    %c0_i32_1 = arith.constant 0 : i32
    return %c0_i32, %c0_i32_0 : i32, i32
  }
  func.func @transform_7(%arg0: i32) -> (i32, i32) {
    %c0_i32 = arith.constant 0 : i32
    %c0_i32_0 = arith.constant 0 : i32
    %c0_i32_1 = arith.constant 0 : i32
    return %c0_i32, %c0_i32_0 : i32, i32
  }
  func.func @transform_8(%arg0: i32) -> (i32, i32) {
    %c0_i32 = arith.constant 0 : i32
    %c0_i32_0 = arith.constant 0 : i32
    %c0_i32_1 = arith.constant 0 : i32
    return %c0_i32, %c0_i32_0 : i32, i32
  }
  func.func @transform_9(%arg0: i32) -> (i32, i32) {
    %c0_i32 = arith.constant 0 : i32
    %c0_i32_0 = arith.constant 0 : i32
    return %arg0, %c0_i32 : i32, i32
  }
}

</mosaic_0001>

<bundles_post_ra>
// kernel: tpu_custom_call.1
= control target key start
LH: loop header
LB: loop body
LE: loop exit
PB: predicated region body
PF: predicated region fallthrough
CT: control target
= control target key end

     0   :  { %14 = vsyncpa [#allocation3], 0  ;;  %s1231_s0 = inlined_call_operand.hbm [shape: f32[16,16], index: 0, kind: input, shape index: {}]   ;;  %s1232_s1 = inlined_call_operand.hbm [shape: f32[16,16], index: 1, kind: input, shape index: {}]   ;;  %s1233_s2 = inlined_call_operand.hbm [shape: f32[8,8], index: 2, kind: input, shape index: {}]   ;;  %s1234_s3 = inlined_call_operand.hbm [shape: f32[16,32], index: 3, kind: input, shape index: {}]   ;;  %s1235_s4 = inlined_call_operand.vmem [shape: f32[1,32], index: 4, kind: input, shape index: {}]   ;;  %s1236_s5 = inlined_call_operand.hbm [shape: f32[16,32], index: 5, kind: input, shape index: {}]   ;;  %s1237_s6 = inlined_call_operand.vmem [shape: f32[1,32], index: 6, kind: input, shape index: {}]   ;;  %s1238_s7 = inlined_call_operand.hbm [shape: f32[16,32], index: 7, kind: input, shape index: {}]   ;;  %s1239_s8 = inlined_call_operand.vmem [shape: f32[1,32], index: 8, kind: input, shape index: {}]   ;;  %s1240_s9 = inlined_call_operand.hbm [shape: f32[2,256], index: 9, kind: output, shape index: {}]  }
   0x1   :  { %15 = vsyncpa [#allocation6], 0 }
   0x2   :  { %16 = vsyncpa [#allocation9], 0 }
   0x3   :  { %17 = vsyncpa [#allocation12], 0 }
   0x4   :  { %18 = vsyncpa [#allocation4], 0  ;;  %s1084_s30 = smov [#allocation5]   ;;  %s1085_s11 = smov [#allocation8]  }
   0x5   :  { %s36_s10 = sshll.u32 %s1084_s30, 4  ;;  %s58_s12 = sshll.u32 %s1085_s11, 4  ;;  %s37_s10 = int_to_ptr.vmem [resolvable:$true] %s36_s10  ;;  %s59_s12 = int_to_ptr.vmem [resolvable:$true] %s58_s12 }
   0x6   :  { %s942_s13 = scalar_lea.vmem %s37_s10, 256  ;;  %p947_p1 = scmp.lt.s32.totalorder %s37_s10, %s37_s10 }
   0x7   :  { %p943_p0 = scmp.ne.s32.totalorder %s37_s10, %s942_s13  ;;  %p948_p2 = scmp.lt.s32.totalorder %s942_s13, %s942_s13 }
   0x9   :  { %p949_p3 = por %p948_p2, %p947_p1 }
   0xb   :  { %p950_p4 = pnand %p949_p3, %p943_p0 }
   0xd   :  { %953 = shalt.err (!%p950_p4)
}
   0xe   :  { %s1086_s14 = smov 128   ;;  %s1087_s15 = smov 8  }
   0xf   :  { %42 = dma.hbm_to_vmem [thread:$0]  %s1232_s1, 256, %s37_s10, [#allocation6], %s1086_s14, %s1086_s14, %s1087_s15  }
  0x10   :  { %s962_s18 = scalar_lea.vmem %s59_s12, 256  ;;  %p967_p6 = scmp.lt.s32.totalorder %s59_s12, %s59_s12 }
  0x11   :  { %p963_p5 = scmp.ne.s32.totalorder %s59_s12, %s962_s18  ;;  %p968_p7 = scmp.lt.s32.totalorder %s962_s18, %s962_s18 }
  0x13   :  { %p969_p8 = por %p968_p7, %p967_p6 }
  0x15   :  { %p970_p9 = pnand %p969_p8, %p963_p5 }
  0x17   :  { %973 = shalt.err (!%p970_p9)
}
  0x18   :  { %64 = dma.hbm_to_vmem [thread:$0]  %s1234_s3, 256, %s59_s12, [#allocation9], %s1086_s14, %s1086_s14, %s1087_s15  }
  0x19   :  { %s1088_s21 = smov [#allocation2]   ;;  %s1089_s23 = smov [#allocation7]  }
  0x1a   :  { %s24_s22 = sshll.u32 %s1088_s21, 4  ;;  %s49_s24 = sshll.u32 %s1089_s23, 4  ;;  %s25_s22 = int_to_ptr.vmem [resolvable:$true] %s24_s22  ;;  %s50_s24 = int_to_ptr.vmem [resolvable:$true] %s49_s24 }
  0x1b   :  { %s982_s1 = scalar_lea.vmem %s25_s22, 256  ;;  %p987_p11 = scmp.lt.s32.totalorder %s25_s22, %s25_s22 }
  0x1c   :  { %p983_p10 = scmp.ne.s32.totalorder %s25_s22, %s982_s1  ;;  %p988_p12 = scmp.lt.s32.totalorder %s982_s1, %s982_s1 }
  0x1e   :  { %p989_p13 = por %p988_p12, %p987_p11 }
  0x20   :  { %p990_p0 = pnand %p989_p13, %p983_p10 }
  0x22   :  { %993 = shalt.err (!%p990_p0)
}
  0x23   :  { %30 = dma.hbm_to_vmem [thread:$0]  %s1231_s0, 256, %s25_s22, [#allocation3], %s1086_s14, %s1086_s14, %s1087_s15  }
  0x24   :  { %s1002_s3 = scalar_lea.vmem %s50_s24, 128  ;;  %p1007_p2 = scmp.lt.s32.totalorder %s50_s24, %s50_s24 }
  0x25   :  { %p1003_p1 = scmp.ne.s32.totalorder %s50_s24, %s1002_s3  ;;  %p1008_p3 = scmp.lt.s32.totalorder %s1002_s3, %s1002_s3 }
  0x27   :  { %p1009_p4 = por %p1008_p3, %p1007_p2 }
  0x29   :  { %p1010_p5 = pnand %p1009_p4, %p1003_p1 }
  0x2b   :  { %1013 = shalt.err (!%p1010_p5)
}
  0x2c   :  { %52 = dma.hbm_to_vmem [thread:$0]  %s1233_s2, 128, %s50_s24, [#allocation6]  }
  0x2d   :  { %s1090_s29 = smov [#allocation10]   ;;  %s1091_s10 = smov [#allocation11]  }
  0x2e   :  { %s72_s30 = sshll.u32 %s1090_s29, 4  ;;  %s86_s11 = sshll.u32 %s1091_s10, 4  ;;  %s73_s30 = int_to_ptr.vmem [resolvable:$true] %s72_s30  ;;  %s87_s11 = int_to_ptr.vmem [resolvable:$true] %s86_s11 }
  0x2f   :  { %s1022_s12 = scalar_lea.vmem %s73_s30, 256  ;;  %p1027_p7 = scmp.lt.s32.totalorder %s73_s30, %s73_s30 }
  0x30   :  { %p1023_p6 = scmp.ne.s32.totalorder %s73_s30, %s1022_s12  ;;  %p1028_p8 = scmp.lt.s32.totalorder %s1022_s12, %s1022_s12 }
  0x32   :  { %p1029_p9 = por %p1028_p8, %p1027_p7 }
  0x34   :  { %p1030_p10 = pnand %p1029_p9, %p1023_p6 }
  0x36   :  { %1033 = shalt.err (!%p1030_p10)
}
  0x37   :  { %78 = dma.hbm_to_vmem [thread:$0]  %s1236_s5, 256, %s73_s30, [#allocation9], %s1086_s14, %s1086_s14, %s1087_s15  }
  0x38   :  { %s1042_s2 = scalar_lea.vmem %s87_s11, 256  ;;  %p1047_p12 = scmp.lt.s32.totalorder %s87_s11, %s87_s11 }
  0x39   :  { %p1043_p11 = scmp.ne.s32.totalorder %s87_s11, %s1042_s2  ;;  %p1048_p13 = scmp.lt.s32.totalorder %s1042_s2, %s1042_s2 }
  0x3b   :  { %p1049_p0 = por %p1048_p13, %p1047_p12 }
  0x3d   :  { %p1050_p1 = pnand %p1049_p0, %p1043_p11 }
  0x3f   :  { %1053 = shalt.err (!%p1050_p1)
}
  0x40   :  { %92 = dma.hbm_to_vmem [thread:$0]  %s1238_s7, 256, %s87_s11, [#allocation12], %s1086_s14, %s1086_s14, %s1087_s15  }
  0x41   :  { %1074 = dma.done.wait [#allocation3], 256  }
  0x42   :  { %1075 = vsyncadd [#allocation3], 4294967040 }
  0x43   :  { %1076 = dma.done.wait [#allocation6], 384  }
  0x44   :  { %1077 = vsyncadd [#allocation6], 4294966912 }
  0x45   :  { %1078 = dma.done.wait [#allocation9], 512  }
  0x46   :  { %1079 = vsyncadd [#allocation9], 4294966784 }
  0x47   :  { %1080 = dma.done.wait [#allocation12], 256  }
  0x48   :  { %1081 = vsyncadd [#allocation12], 4294967040  ;;  %v209_v0 = vld [vmem:[#allocation10 + $0x8] sm:$0xff]  ;;  %v116_v1 = vld [vmem:[#allocation8 + $0x8] sm:$0xff]  ;;  %vm124_vm0 = vcmask 130048   ;;  %v1092_v10 = vmov 0.0   ;;  %v709_v53 = vlaneseq }
  0x49   :  { %v208_v2 = vld [vmem:[#allocation10] sm:$0xff]  ;;  %876 = vmatprep.subr.mxu1 %v209_v0  ;;  %869 = vmatprep.subr.mxu0 %v116_v1  ;;  %v206_v3 = vld [vmem:[#allocation5] sm:$0xff]  ;;  %v115_v4 = vld [vmem:[#allocation8] sm:$0xff]  ;;  %vm1093_vm1 = vmmov 0   ;;  %vm383_vm2 = vcmask 261120   ;;  %vm536_vm3 = vcmask 64512  }
  0x4a   :  { %877 = vmatpush3.msra.mxu1 %v209_v0  ;;  %870 = vmatpush3.msra.mxu0 %v116_v1  ;;  %v207_v5 = vld [vmem:[#allocation5 + $0x8] sm:$0xff]  ;;  %v113_v6 = vld [vmem:[#allocation2] sm:$0xff]  ;;  %v299_v7 = vld [vmem:[#allocation11 + $0x8] sm:$0xff]  ;;  %v1094_v51 = vmov 1983009808   ;;  %v710_v55 = vshrl.u32 %v709_v53, 7 }
  0x4b   :  { %878 = vmatprep.subr.mxu1 %v208_v2  ;;  %880 = vmatprep.mubr.msk.f32.mxu1 %vm124_vm0, %v206_v3  ;;  %v114_v8 = vld [vmem:[#allocation2 + $0x8] sm:$0xff]  ;;  %v836_v11 = vld [vmem:[%s1237_s6] ss:$0 sm:$0xff]  ;;  %v707_v52 = vunpack.c.l.s4 %v1094_v51  ;;  %v1095_v56 = vmov 1934713408   ;;  %s1097_s18 = smov 32  }
  0x4c   :  { %879 = vmatpush3.msra.mxu1 %v208_v2  ;;  %871 = vmatprep.subr.mxu0 %v115_v4  ;;  %v298_v9 = vld [vmem:[#allocation11] sm:$0xff]  ;;  %v833_v13 = vld [vmem:[%s1235_s4] ss:$0 sm:$0xff]  ;;  %v738_v57 = vunpack.c.l.s4 %v1095_v56  ;;  %s1098_s19 = smov 96   ;;  %vm796_vm4 = vcmask 523264   ;;  %vm798_vm5 = vcmask 785408  }
  0x4d   :  { %881 = vmatmul.mubr.msk.f32.vlgmr.msra.gmra.mxu1 %vm124_vm0, %v207_v5  ;;  %872 = vmatpush3.msra.mxu0 %v115_v4  ;;  %v839_v21 = vld [vmem:[%s1239_s8] ss:$0 sm:$0xff]  ;;  %v708_v54 = vunpack.c.0.s8 %v707_v52  ;;  %s1096_s8 = smov 64   ;;  %s1099_s20 = smov [#allocation13]  }
  0x4e   :  { %873 = vmatprep.mubr.msk.f32.mxu0 %vm124_vm0, %v113_v6  ;;  %883 = vmatprep.subr.mxu0 %v299_v7  ;;  %v382_v27 = vld [vmem:[#allocation7] sm:$0xff]  ;;  %v739_v60 = vunpack.c.0.s8 %v738_v57  ;;  %s821_s21 = sshll.u32 %s1099_s20, 4  ;;  %s822_s21 = int_to_ptr.vmem [resolvable:$true] %s821_s21 }
  0x4f   :  { %874 = vmatmul.mubr.msk.f32.vlgmr.msra.gmra.mxu0 %vm124_vm0, %v114_v8  ;;  %890 = vmatprep.subr.mxu1 %v1092_v10  ;;  %v711_v59 = vsub.s32 %v708_v54, %v710_v55  ;;  %s1054_s22 = scalar_lea.vmem %s822_s21, 64  ;;  %p1059_p3 = scmp.lt.s32.totalorder %s822_s21, %s822_s21 }
  0x50   :  { %884 = vmatpush3.msra.mxu0 %v299_v7  ;;  %887 = vmatprep.mubr.msk.f32.mxu0 %vm124_vm0, %v206_v3  ;;  %v742_v3 = vsub.s32 %v739_v60, %v710_v55  ;;  %p1055_p2 = scmp.ne.s32.totalorder %s822_s21, %s1054_s22  ;;  %p1060_p4 = scmp.lt.s32.totalorder %s1054_s22, %s1054_s22 }
  0x51   :  { %885 = vmatprep.subr.mxu0 %v298_v9  ;;  %892 = vmatprep.mubr.msk.f32.mxu1 %vm1093_vm1, %v1092_v10 }
  0x52   :  { %886 = vmatpush3.msra.mxu0 %v298_v9  ;;  %p1061_p5 = por %p1060_p4, %p1059_p3 }
  0x53   :  { %888 = vmatmul.mubr.msk.f32.vlgmr.msra.gmra.mxu0 %vm124_vm0, %v207_v5  ;;  %895 = vmatprep.subr.mxu0 %v1092_v10 }
  0x54   :  { %897 = vmatprep.mubr.msk.f32.mxu0 %vm1093_vm1, %v1092_v10  ;;  %p1062_p6 = pnand %p1061_p5, %p1055_p2 }
 0x10d   :  { %v882_v12 = vpop.f32.mrf.mxu1 }
 0x10e   :  { %v295_v14 = vadd.f32 %v882_v12, %v836_v11 }
 0x10f   :  { %v875_v15 = vpop.f32.mrf.mxu0  ;;  %v289_v16 = vpop.f32.mrf.mxu1 }
 0x110   :  { %v203_v17 = vadd.f32 %v875_v15, %v833_v13  ;;  %v290_v18 = vadd.f32 %v836_v11, %v289_v16  ;;  %896 = vmatpush3.xpose.msk.msra.mxu0 %vm383_vm2, %v295_v14 }
 0x111   :  { %v197_v19 = vpop.f32.mrf.mxu0  ;;  %905 = vmatprep.subr.mxu0 %v1092_v10 }
 0x112   :  { %891 = vmatpush3.xpose.msk.msra.mxu1 %vm383_vm2, %v290_v18  ;;  %v198_v20 = vadd.f32 %v833_v13, %v197_v19 }
 0x113   :  { %898 = vmatmul.mubr.msk.f32.vlgmr.msra.gmra.mxu0 %vm383_vm2, %v203_v17  ;;  %900 = vmatprep.subr.mxu1 %v1092_v10  ;;  %v889_v22 = vpop.f32.mrf.mxu0 }
 0x114   :  { %907 = vmatprep.mubr.msk.f32.mxu0 %vm1093_vm1, %v1092_v10  ;;  %v379_v23 = vadd.f32 %v889_v22, %v839_v21 }
 0x115   :  { %893 = vmatmul.mubr.msk.f32.vlgmr.msra.gmra.mxu1 %vm383_vm2, %v198_v20  ;;  %v373_v24 = vpop.f32.mrf.mxu0 }
 0x116   :  { %902 = vmatprep.mubr.msk.f32.mxu1 %vm1093_vm1, %v1092_v10  ;;  %v374_v25 = vadd.f32 %v839_v21, %v373_v24  ;;  %906 = vmatpush3.msra.mxu0 %v379_v23 }
 0x118   :  { %901 = vmatpush3.msra.mxu1 %v374_v25 }
 0x1d3   :  { %v532_v26 = vpop.f32.mrf.mxu0 }
 0x1d4   :  { %v533_v32 = vadd.f32 %v532_v26, %v382_v27 }
 0x1d5   :  { %v456_v28 = vpop.f32.mrf.mxu1  ;;  %v899_v29 = vpop.f32.mrf.mxu0 }
 0x1d6   :  { %v457_v30 = vadd.f32 %v456_v28, %v382_v27  ;;  %v540_v34 = vsel %vm536_vm3, %v533_v32, -inf }
 0x1d7   :  { %v894_v31 = vpop.f32.mrf.mxu1 }
 0x1d8   :  { %v537_v33 = vsel %vm536_vm3, %v457_v30, -inf }
 0x1d9   :  { %538 = vmax.xlane.f32.xlu0 %v537_v33 }
 0x1dd   :  { %541 = vmax.xlane.f32.xlu0 %v540_v34 }
 0x262   :  { %v539_v35 = vpop.xlane.xlu0 %538 }
 0x263   :  { %v543_v36 = vsub.f32 %v457_v30, %v539_v35 }
 0x265   :  { %v545_v37 = vmul.f32 1.442695, %v543_v36 }
 0x266   :  { %v542_v38 = vpop.xlane.xlu0 %541 }
 0x267   :  { %926 = vpow2.f32 %v545_v37  ;;  %v544_v39 = vsub.f32 %v533_v32, %v542_v38 }
 0x269   :  { %v547_v40 = vmul.f32 1.442695, %v544_v39 }
 0x26b   :  { %928 = vpow2.f32 %v547_v40 }
 0x274   :  { %v927_v41 = vpop.eup %926 }
 0x275   :  { %v549_v42 = vsel %vm536_vm3, %v927_v41, 0.0 }
 0x276   :  { %550 = vadd.xlane.f32.xlu1 %v549_v42 }
 0x278   :  { %v929_v43 = vpop.eup %928 }
 0x279   :  { %v552_v44 = vsel %vm536_vm3, %v929_v43, 0.0 }
 0x27a   :  { %553 = vadd.xlane.f32.xlu1 %v552_v44 }
 0x2ff   :  { %v551_v45 = vpop.xlane.xlu1 %550 }
 0x300   :  { %930 = vrcp.f32 %v551_v45 }
 0x303   :  { %v554_v46 = vpop.xlane.xlu1 %553 }
 0x304   :  { %932 = vrcp.f32 %v554_v46 }
 0x30d   :  { %v931_v47 = vpop.eup %930 }
 0x30e   :  { %v556_v48 = vmul.f32 %v931_v47, %v927_v41 }
 0x310   :  { %903 = vmatmul.mubr.msk.f32.vlgmr.msra.gmra.mxu1 %vm536_vm3, %v556_v48 }
 0x311   :  { %v933_v49 = vpop.eup %932 }
 0x312   :  { %v558_v50 = vmul.f32 %v933_v49, %v929_v43 }
 0x314   :  { %908 = vmatmul.mubr.msk.f32.vlgmr.msra.gmra.mxu0 %vm536_vm3, %v558_v50 }
 0x3d0   :  { %v628_v58 = vpop.f32.mrf.mxu1 }
 0x3d1   :  { %v705_v62 = vcombine.high %v628_v58, %v1092_v10  ;;  %v712_v0 = vrot.slane %v628_v58, %v711_v59 }
 0x3d2   :  { %v904_v61 = vpop.f32.mrf.mxu1 }
 0x3d3   :  { %v719_v5 = vrot.slane %v705_v62, %v711_v59 }
 0x3d4   :  { %v701_v63 = vpop.f32.mrf.mxu0 }
 0x3d5   :  { %v720_v1 = vcombine.high %v701_v63, %v1092_v10  ;;  %v727_v2 = vrot.slane %v701_v63, %v711_v59 }
 0x3d6   :  { %v909_v4 = vpop.f32.mrf.mxu0 }
 0x3d7   :  { %v734_v6 = vrot.slane %v720_v1, %v711_v59  ;;  %v735_v7 = vcombine.low %v712_v0, %v727_v2  ;;  %v736_v8 = vcombine.high %v712_v0, %v727_v2 }
 0x3d9   :  { %v743_v9 = vrot.slane %v735_v7, %v742_v3  ;;  %v751_v11 = vcombine.low %v719_v5, %v734_v6  ;;  %v752_v12 = vcombine.high %v719_v5, %v734_v6  ;;  %v750_v13 = vrot.slane %v736_v8, %v742_v3 }
 0x3db   :  { %776 = vrot.lane.b32.xlu1 %v750_v13, %s1096_s8  ;;  %v767_v14 = vcombine.high %v743_v9, %v1092_v10  ;;  %v766_v15 = vrot.slane %v752_v12, %v742_v3  ;;  %v759_v16 = vrot.slane %v751_v11, %v742_v3  ;;  %v768_v17 = vcombine.high %v750_v13, %v1092_v10 }
 0x3dd   :  { %772 = vrot.lane.b32.xlu0 %v767_v14, %s1097_s18  ;;  %v769_v18 = vcombine.high %v759_v16, %v1092_v10  ;;  %v770_v19 = vcombine.high %v766_v15, %v1092_v10 }
 0x3df   :  { %788 = vrot.lane.b32.xlu1 %v766_v15, %s1096_s8 }
 0x3e1   :  { %780 = vrot.lane.b32.xlu0 %v768_v17, %s1098_s19 }
 0x3e3   :  { %784 = vrot.lane.b32.xlu1 %v769_v18, %s1097_s18 }
 0x3e7   :  { %792 = vrot.lane.b32.xlu1 %v770_v19, %s1098_s19 }
 0x44d   :  { %v777_v20 = vpop.permute.xlu1 %776 }
 0x44f   :  { %v773_v21 = vpop.permute.xlu0 %772 }
 0x450   :  { %v795_v24 = vsel %vm383_vm2, %v743_v9, %v773_v21 }
 0x451   :  { %v789_v22 = vpop.permute.xlu1 %788  ;;  %v797_v27 = vsel %vm796_vm4, %v795_v24, %v777_v20 }
 0x453   :  { %v781_v26 = vpop.permute.xlu0 %780 }
 0x454   :  { %v799_v30 = vsel %vm798_vm5, %v797_v27, %v781_v26 }
 0x455   :  { %v785_v23 = vpop.permute.xlu1 %784 }
 0x456   :  { %v800_v25 = vsel %vm383_vm2, %v759_v16, %v785_v23 }
 0x457   :  { %v801_v28 = vsel %vm796_vm4, %v800_v25, %v789_v22 }
 0x459   :  { %v793_v29 = vpop.permute.xlu1 %792 }
 0x45a   :  { %v802_v31 = vsel %vm798_vm5, %v801_v28, %v793_v29 }
 0x45b   :  { %v805_v10 = vcombine.low %v799_v30, %v802_v31 }
 0x45d   :  { %848 = vst.sshfl [vmem:[#allocation13] sm:$0x33 pattern:$0x76325410] %v805_v10 }
 0x45e   :  { %1065 = shalt.err (!%p1062_p6)
}
 0x45f   :  { %824 = dma.vmem_to_hbm [thread:$0]  %s822_s21, 64, %s1240_s9, [#allocation4]  }
 0x460   :  { %1082 = dma.done.wait [#allocation4], 64  }
 0x461   :  { %1083 = vsyncadd [#allocation4], 4294967232 }
 0x462   :  { %828 = vsyncpa [#allocation3], 1 }
 0x463   :  { %829 = vsyncpa [#allocation6], 1 }
 0x464   :  { %830 = vsyncpa [#allocation9], 1 }
 0x465   :  { %831 = vsyncpa [#allocation12], 1 }
 0x466   :  { %832 = vsyncpa [#allocation4], 1 }

</bundles_post_ra>
